<compile_context>
chip_gen: v6e
topology: v6e:2x2x1
jax: 0.10.0
libtpu: 0.0.40
codegen_flags: <defaults>
</compile_context>

<pallas_src>
import dataclasses
import functools
import warnings

import jax
import jax.numpy as jnp
import numpy as np
from jax.experimental import pallas as pl
from jax.experimental.pallas import tpu as pltpu

# Precautionary: if XLA cannot alias a tiny reshaped bias buffer through the
# donated update it falls back to a copy and warns; keep stderr clean.
warnings.filterwarnings("ignore", message="Some donated buffers were not usable")

_LANES = 128
# 512 x 128 x f32 = 256 KiB per block (was 2048): same measured HBM-roofline
# fraction, far less worst-case padding, and a longer grid for pipelining /
# v7x dual-TC sharding.
_MAX_BLOCK_ROWS = 512


# ---------------------------------------------------------------------------
# Inner-module forward kernel (Linear -> ReLU -> Linear), whole problem in VMEM
# ---------------------------------------------------------------------------

def mlp_forward_kernel(x_ref, w1_ref, b1_ref, w2_ref, b2_ref, o_ref):
    x = x_ref[...]
    h = jnp.dot(x, w1_ref[...], preferred_element_type=jnp.float32) + b1_ref[...]
    h = jnp.maximum(h, 0.0)
    y = jnp.dot(h, w2_ref[...], preferred_element_type=jnp.float32) + b2_ref[...]
    o_ref[...] = y.astype(o_ref.dtype)


def mlp_forward(x, params):
    """AveragedModel.forward -> inner module forward with the averaged params."""
    w1, b1, w2, b2 = params["w1"], params["b1"], params["w2"], params["b2"]
    B = x.shape[0]
    D_out = w2.shape[1]
    vmem = pl.BlockSpec(memory_space=pltpu.MemorySpace.VMEM)
    # TODO(synk): before scaling the inner module, switch to bf16 x/W MXU tiles
    # (>=256-row activation tiles on v6e/v7x, 128 on v5e) with a K-tiled grid +
    # f32 VMEM accumulator, and size the tiles for v7x's 64 MiB physical /
    # 32 MiB scoped VMEM rather than v5e/v6e's 128 MiB.
    return pl.pallas_call(
        mlp_forward_kernel,
        out_shape=jax.ShapeDtypeStruct((B, D_out), x.dtype),
        in_specs=[vmem] * 5,
        out_specs=vmem,
    )(x, w1, b1.reshape(1, -1), w2, b2.reshape(1, -1))


# ---------------------------------------------------------------------------
# SWA running-average kernel (AveragedModel.update_parameters hot path)
# ---------------------------------------------------------------------------

def swa_update_kernel(swa_ref, model_ref, inv_ref, out_ref):
    # avg_fn: p_swa + (p_model - p_swa) / (n_averaged + 1).
    # inv = 1/(n+1) is precomputed on the host and lives in SMEM; the model
    # stream is upcast in-kernel so it travels HBM->VMEM in its native dtype.
    inv = inv_ref[0, 0]
    p_swa = swa_ref[...]
    out_ref[...] = p_swa + (model_ref[...].astype(jnp.float32) - p_swa) * inv


def _choose_block_rows(rows):
    """Block row count: multiple of 8, divides `rows`, <= _MAX_BLOCK_ROWS, and
    small enough to give >= 4 grid steps when possible (restores double-buffer
    pipelining and enables dual-TC sharding on v7x)."""
    if rows % 8 != 0 or rows <= 32:
        return rows                       # single full-array block
    cap = min(_MAX_BLOCK_ROWS, max(8, (rows // 4) // 8 * 8))
    for br in range(cap, 7, -8):
        if rows % br == 0:
            return br
    return rows


def _update_leaf_2d(swa2, model2, inv_arr):
    rows, cols = swa2.shape
    block_rows = _choose_block_rows(rows)
    grid = (rows // block_rows,)
    return pl.pallas_call(
        swa_update_kernel,
        out_shape=jax.ShapeDtypeStruct((rows, cols), jnp.float32),
        grid=grid,
        in_specs=[
            pl.BlockSpec((block_rows, cols), lambda i: (i, 0)),   # p_swa (f32)
            pl.BlockSpec((block_rows, cols), lambda i: (i, 0)),   # p_model (native dtype)
            pl.BlockSpec(memory_space=pltpu.MemorySpace.SMEM),    # 1/(n+1) scalar
        ],
        out_specs=pl.BlockSpec((block_rows, cols), lambda i: (i, 0)),
        # Operand order is (swa, model, inv): alias the SWA accumulator
        # (operand 0) onto the single output so the update is in place.  The
        # end-to-end numerical check in __main__ pins this.
        input_output_aliases={0: 0},
        compiler_params=pltpu.CompilerParams(
            dimension_semantics=("parallel",)),   # shard grid across v7x's 2 TCs
    )(swa2, model2, inv_arr)


def _update_param(swa_leaf, model_leaf, inv_arr):
    """Per-leaf running-average update on the raw leaf (no slab traffic)."""
    shape = swa_leaf.shape
    if swa_leaf.ndim == 2:
        swa2, model2 = swa_leaf, model_leaf
    else:
        # 0-D / 1-D / N-D leaves: present a lane-dense 2-D view (free reshape).
        size = max(int(swa_leaf.size), 1)
        if size >= _LANES and size % _LANES == 0:
            view = (size // _LANES, _LANES)
        else:
            view = (1, size)
        swa2 = swa_leaf.reshape(view)
        model2 = model_leaf.reshape(view)
    out2 = _update_leaf_2d(swa2, model2, inv_arr)
    return out2.reshape(shape)


@functools.partial(jax.jit, donate_argnums=0)
def _swa_update_all(swa_params, model_params, inv_arr):
    """One jitted dispatch for the whole pytree (kernels are us-scale)."""
    return jax.tree_util.tree_map(
        lambda s, m: _update_param(s, m, inv_arr), swa_params, model_params)


# ---------------------------------------------------------------------------
# AveragedModel state + wrappers
# ---------------------------------------------------------------------------

@dataclasses.dataclass
class SWAState:
    params: dict          # f32 accumulator pytree (mirrors the model params)
    dtypes: dict          # original per-leaf dtypes (for export / forward)
    treedef: object
    shapes: tuple
    n_averaged: int       # mirrors the torch `n_averaged` buffer


def swa_init(params):
    """Mirrors AveragedModel.__init__ (deepcopy of the wrapped module params)."""
    accum = jax.tree_util.tree_map(
        lambda p: jnp.array(p, dtype=jnp.float32), params)    # explicit copy
    leaves, treedef = jax.tree_util.tree_flatten(params)
    return SWAState(
        params=accum,
        dtypes=jax.tree_util.tree_map(lambda p: p.dtype, params),
        treedef=treedef,
        shapes=tuple(l.shape for l in leaves),
        n_averaged=0,
    )


def swa_parameters(state):
    """Averaged parameters as a pytree in the original leaf dtypes."""
    return jax.tree_util.tree_map(lambda p, dt: p.astype(dt),
                                  state.params, state.dtypes)


def swa_update_parameters(state, params_model):
    """AveragedModel.update_parameters; returns a new SWAState."""
    # Structure check: treedef + per-leaf shapes, not just padded totals.
    leaves, treedef = jax.tree_util.tree_flatten(params_model)
    assert treedef == state.treedef, "parameter pytree structure mismatch"
    assert tuple(l.shape for l in leaves) == state.shapes, "parameter shape mismatch"

    if state.n_averaged == 0:
        # First call: plain adoption (copy) of the model parameters.  jnp.array
        # copies, so later donated in-place updates never touch the caller's
        # snapshot buffers.
        new_params = jax.tree_util.tree_map(
            lambda p: jnp.array(p, dtype=jnp.float32), params_model)
        return dataclasses.replace(state, params=new_params, n_averaged=1)

    # Scalar 1/(n+1) computed once, shipped to SMEM; kernel body is a pure FMA.
    inv_arr = jnp.full((1, 1), 1.0 / (state.n_averaged + 1.0), dtype=jnp.float32)
    new_params = _swa_update_all(state.params, params_model, inv_arr)
    return dataclasses.replace(state, params=new_params,
                               n_averaged=state.n_averaged + 1)

# TODO(synk): `use_buffers=True` buffer averaging is the identical per-leaf
# kernel applied to the buffer pytree; the synthetic inner module has none.


# ---------------------------------------------------------------------------
# Deterministic parameter construction + demo
# ---------------------------------------------------------------------------

def make_params(key, d_in, d_hidden, d_out):
    k1, k2, k3, k4 = jax.random.split(key, 4)
    return {
        "w1": jax.random.normal(k1, (d_in, d_hidden), jnp.float32) * 0.1,
        "b1": jax.random.normal(k2, (d_hidden,), jnp.float32) * 0.1,
        "w2": jax.random.normal(k3, (d_hidden, d_out), jnp.float32) * 0.1,
        "b2": jax.random.normal(k4, (d_out,), jnp.float32) * 0.1,
    }


def mlp_forward_ref(x, p):
    h = jnp.maximum(x @ p["w1"] + p["b1"], 0.0)
    return h @ p["w2"] + p["b2"]


if __name__ == "__main__":
    key = jax.random.PRNGKey(0)
    k_swa, k_m1, k_m2, k_m3, k_x = jax.random.split(key, 5)

    # Small, lane/sublane-aligned demo shapes.
    B, D_IN, D_H, D_OUT = 8, 128, 128, 128
    x = jax.random.normal(k_x, (B, D_IN), jnp.float32)

    # "deepcopied" averaged-module params and three training snapshots.
    params_init = make_params(k_swa, D_IN, D_H, D_OUT)
    snapshot_1 = make_params(k_m1, D_IN, D_H, D_OUT)
    snapshot_2 = make_params(k_m2, D_IN, D_H, D_OUT)
    snapshot_3 = make_params(k_m3, D_IN, D_H, D_OUT)

    state = swa_init(params_init)

    # update_parameters x3: copy, then running averages with n_averaged = 1, 2.
    state = swa_update_parameters(state, snapshot_1)
    state = swa_update_parameters(state, snapshot_2)
    state = swa_update_parameters(state, snapshot_3)
    assert state.n_averaged == 3

    params_swa = swa_parameters(state)
    jax.block_until_ready(params_swa)

    # Pure-JAX reference of the same three updates.
    ref = jax.tree_util.tree_map(lambda p: p.astype(jnp.float32), snapshot_1)
    ref = jax.tree_util.tree_map(lambda a, b: a + (b - a) / 2.0, ref, snapshot_2)
    ref = jax.tree_util.tree_map(lambda a, b: a + (b - a) / 3.0, ref, snapshot_3)
    for k in params_swa:
        np.testing.assert_allclose(np.asarray(params_swa[k]),
                                   np.asarray(ref[k]), rtol=1e-5, atol=1e-5)

    # AveragedModel.forward -> inner module forward with the averaged params.
    y = mlp_forward(x, params_swa)
    jax.block_until_ready(y)
    y_ref = mlp_forward_ref(x, ref)
    np.testing.assert_allclose(np.asarray(y), np.asarray(y_ref),
                               rtol=1e-4, atol=1e-4)

    print("KERNEL_OK")
</pallas_src>

<mosaic_0001>
module attributes {stable_mosaic.version = 11 : i64} {
  func.func @swa_update_kernel(%arg0: i32, %arg1: memref<32x128xf32, #tpu.memory_space<vmem>>, %arg2: memref<32x128xf32, #tpu.memory_space<vmem>>, %arg3: memref<1x1xf32, #tpu.memory_space<smem>>, %arg4: memref<32x128xf32, #tpu.memory_space<vmem>>) attributes {dimension_semantics = [#tpu.dimension_semantics<parallel>], iteration_bounds = array<i64: 4>, scalar_prefetch = 0 : i64, scratch_operands = 0 : i64, tpu.core_type = #tpu.core_type<tc>, window_params = [{transform_indices = @transform_0, window_bounds = array<i64: 32, 128>}, {transform_indices = @transform_1, window_bounds = array<i64: 32, 128>}, {transform_indices = @transform_2, window_bounds = array<i64: 1, 1>}, {transform_indices = @transform_3, window_bounds = array<i64: 32, 128>}]} {
    %c0 = arith.constant 0 : index
    %c0_0 = arith.constant 0 : index
    %0 = memref.load %arg3[%c0, %c0_0] : memref<1x1xf32, #tpu.memory_space<smem>>
    %c0_1 = arith.constant 0 : index
    %c0_2 = arith.constant 0 : index
    %1 = vector.load %arg1[%c0_1, %c0_2] : memref<32x128xf32, #tpu.memory_space<vmem>>, vector<32x128xf32>
    %c0_3 = arith.constant 0 : index
    %c0_4 = arith.constant 0 : index
    %2 = vector.load %arg2[%c0_3, %c0_4] : memref<32x128xf32, #tpu.memory_space<vmem>>, vector<32x128xf32>
    %3 = arith.subf %2, %1 : vector<32x128xf32>
    %4 = vector.broadcast %0 : f32 to vector<32x128xf32>
    %5 = arith.mulf %3, %4 : vector<32x128xf32>
    %6 = arith.addf %1, %5 : vector<32x128xf32>
    %c0_5 = arith.constant 0 : index
    %c0_6 = arith.constant 0 : index
    %7 = vector.load %arg4[%c0_5, %c0_6] : memref<32x128xf32, #tpu.memory_space<vmem>>, vector<32x128xf32>
    tpu.vector_store %arg4[%c0_5, %c0_6], %6 {strides = array<i32>} : memref<32x128xf32, #tpu.memory_space<vmem>>, vector<32x128xf32>,
    return
  }
  func.func @transform_0(%arg0: i32) -> (i32, i32) {
    %c0_i32 = arith.constant 0 : i32
    %c0_i32_0 = arith.constant 0 : i32
    return %arg0, %c0_i32 : i32, i32
  }
  func.func @transform_1(%arg0: i32) -> (i32, i32) {
    %c0_i32 = arith.constant 0 : i32
    %c0_i32_0 = arith.constant 0 : i32
    return %arg0, %c0_i32 : i32, i32
  }
  func.func @transform_2(%arg0: i32) -> (i32, i32) {
    %c0_i32 = arith.constant 0 : i32
    %c0_i32_0 = arith.constant 0 : i32
    %c0_i32_1 = arith.constant 0 : i32
    return %c0_i32, %c0_i32_0 : i32, i32
  }
  func.func @transform_3(%arg0: i32) -> (i32, i32) {
    %c0_i32 = arith.constant 0 : i32
    %c0_i32_0 = arith.constant 0 : i32
    return %arg0, %c0_i32 : i32, i32
  }
}

module attributes {stable_mosaic.version = 11 : i64} {
  func.func @swa_update_kernel(%arg0: i32, %arg1: memref<1x128xf32, #tpu.memory_space<vmem>>, %arg2: memref<1x128xf32, #tpu.memory_space<vmem>>, %arg3: memref<1x1xf32, #tpu.memory_space<smem>>, %arg4: memref<1x128xf32, #tpu.memory_space<vmem>>) attributes {dimension_semantics = [#tpu.dimension_semantics<parallel>], iteration_bounds = array<i64: 1>, scalar_prefetch = 0 : i64, scratch_operands = 0 : i64, tpu.core_type = #tpu.core_type<tc>, window_params = [{transform_indices = @transform_0, window_bounds = array<i64: 1, 128>}, {transform_indices = @transform_1, window_bounds = array<i64: 1, 128>}, {transform_indices = @transform_2, window_bounds = array<i64: 1, 1>}, {transform_indices = @transform_3, window_bounds = array<i64: 1, 128>}]} {
    %c0 = arith.constant 0 : index
    %c0_0 = arith.constant 0 : index
    %0 = memref.load %arg3[%c0, %c0_0] : memref<1x1xf32, #tpu.memory_space<smem>>
    %c0_1 = arith.constant 0 : index
    %c0_2 = arith.constant 0 : index
    %1 = vector.load %arg1[%c0_1, %c0_2] : memref<1x128xf32, #tpu.memory_space<vmem>>, vector<1x128xf32>
    %c0_3 = arith.constant 0 : index
    %c0_4 = arith.constant 0 : index
    %2 = vector.load %arg2[%c0_3, %c0_4] : memref<1x128xf32, #tpu.memory_space<vmem>>, vector<1x128xf32>
    %3 = arith.subf %2, %1 : vector<1x128xf32>
    %4 = vector.broadcast %0 : f32 to vector<1x128xf32>
    %5 = arith.mulf %3, %4 : vector<1x128xf32>
    %6 = arith.addf %1, %5 : vector<1x128xf32>
    %c0_5 = arith.constant 0 : index
    %c0_6 = arith.constant 0 : index
    %7 = vector.load %arg4[%c0_5, %c0_6] : memref<1x128xf32, #tpu.memory_space<vmem>>, vector<1x128xf32>
    tpu.vector_store %arg4[%c0_5, %c0_6], %6 {strides = array<i32>} : memref<1x128xf32, #tpu.memory_space<vmem>>, vector<1x128xf32>,
    return
  }
  func.func @transform_0(%arg0: i32) -> (i32, i32) {
    %c0_i32 = arith.constant 0 : i32
    %c0_i32_0 = arith.constant 0 : i32
    return %arg0, %c0_i32 : i32, i32
  }
  func.func @transform_1(%arg0: i32) -> (i32, i32) {
    %c0_i32 = arith.constant 0 : i32
    %c0_i32_0 = arith.constant 0 : i32
    return %arg0, %c0_i32 : i32, i32
  }
  func.func @transform_2(%arg0: i32) -> (i32, i32) {
    %c0_i32 = arith.constant 0 : i32
    %c0_i32_0 = arith.constant 0 : i32
    %c0_i32_1 = arith.constant 0 : i32
    return %c0_i32, %c0_i32_0 : i32, i32
  }
  func.func @transform_3(%arg0: i32) -> (i32, i32) {
    %c0_i32 = arith.constant 0 : i32
    %c0_i32_0 = arith.constant 0 : i32
    return %arg0, %c0_i32 : i32, i32
  }
}

module attributes {stable_mosaic.version = 11 : i64} {
  func.func @swa_update_kernel(%arg0: i32, %arg1: memref<32x128xf32, #tpu.memory_space<vmem>>, %arg2: memref<32x128xf32, #tpu.memory_space<vmem>>, %arg3: memref<1x1xf32, #tpu.memory_space<smem>>, %arg4: memref<32x128xf32, #tpu.memory_space<vmem>>) attributes {dimension_semantics = [#tpu.dimension_semantics<parallel>], iteration_bounds = array<i64: 4>, scalar_prefetch = 0 : i64, scratch_operands = 0 : i64, tpu.core_type = #tpu.core_type<tc>, window_params = [{transform_indices = @transform_0, window_bounds = array<i64: 32, 128>}, {transform_indices = @transform_1, window_bounds = array<i64: 32, 128>}, {transform_indices = @transform_2, window_bounds = array<i64: 1, 1>}, {transform_indices = @transform_3, window_bounds = array<i64: 32, 128>}]} {
    %c0 = arith.constant 0 : index
    %c0_0 = arith.constant 0 : index
    %0 = memref.load %arg3[%c0, %c0_0] : memref<1x1xf32, #tpu.memory_space<smem>>
    %c0_1 = arith.constant 0 : index
    %c0_2 = arith.constant 0 : index
    %1 = vector.load %arg1[%c0_1, %c0_2] : memref<32x128xf32, #tpu.memory_space<vmem>>, vector<32x128xf32>
    %c0_3 = arith.constant 0 : index
    %c0_4 = arith.constant 0 : index
    %2 = vector.load %arg2[%c0_3, %c0_4] : memref<32x128xf32, #tpu.memory_space<vmem>>, vector<32x128xf32>
    %3 = arith.subf %2, %1 : vector<32x128xf32>
    %4 = vector.broadcast %0 : f32 to vector<32x128xf32>
    %5 = arith.mulf %3, %4 : vector<32x128xf32>
    %6 = arith.addf %1, %5 : vector<32x128xf32>
    %c0_5 = arith.constant 0 : index
    %c0_6 = arith.constant 0 : index
    %7 = vector.load %arg4[%c0_5, %c0_6] : memref<32x128xf32, #tpu.memory_space<vmem>>, vector<32x128xf32>
    tpu.vector_store %arg4[%c0_5, %c0_6], %6 {strides = array<i32>} : memref<32x128xf32, #tpu.memory_space<vmem>>, vector<32x128xf32>,
    return
  }
  func.func @transform_0(%arg0: i32) -> (i32, i32) {
    %c0_i32 = arith.constant 0 : i32
    %c0_i32_0 = arith.constant 0 : i32
    return %arg0, %c0_i32 : i32, i32
  }
  func.func @transform_1(%arg0: i32) -> (i32, i32) {
    %c0_i32 = arith.constant 0 : i32
    %c0_i32_0 = arith.constant 0 : i32
    return %arg0, %c0_i32 : i32, i32
  }
  func.func @transform_2(%arg0: i32) -> (i32, i32) {
    %c0_i32 = arith.constant 0 : i32
    %c0_i32_0 = arith.constant 0 : i32
    %c0_i32_1 = arith.constant 0 : i32
    return %c0_i32, %c0_i32_0 : i32, i32
  }
  func.func @transform_3(%arg0: i32) -> (i32, i32) {
    %c0_i32 = arith.constant 0 : i32
    %c0_i32_0 = arith.constant 0 : i32
    return %arg0, %c0_i32 : i32, i32
  }
}

</mosaic_0001>

<bundles_post_ra>
// kernel: _swa_update_all.7
= control target key start
LH: loop header
LB: loop body
LE: loop exit
PB: predicated region body
PF: predicated region fallthrough
CT: control target
= control target key end

     0   :  { %s343_s14 = smov 0   ;;  %s363_s0 = inlined_call_operand.vmem [shape: f32[128,128], index: 0, kind: input, shape index: {}, may-alias: {0,3}]   ;;  %s364_s1 = inlined_call_operand.vmem [shape: f32[128,128], index: 1, kind: input, shape index: {}]   ;;  %s365_s2 = inlined_call_operand.<no memory space> [shape: f32[1,1], index: 2, kind: input, shape index: {}]   ;;  %s366_s3 = inlined_call_operand.vmem [shape: f32[128,128], index: 3, kind: output, shape index: {}, may-alias: {0,3}]  }
   0x1   :  { %8 = sst [smem:[#allocation2]] %s365_s2 }
   0x2 LB: > { %s291_s15 = sadd.s32 4294967295, %s318_s14   ;;  %p295_p0 = scmp.ge.s32.totalorder %s318_s14, 1  ;;  %s318_s14 = sphi %s343_s14, %s14_s14  }
   0x3   : > { %p150_p1 = scmp.lt.s32.totalorder %s318_s14, 5 }
   0x5   : > { %p151_p2 = pnand %p295_p0, %p150_p1 }
   0x6   : > { %s296_s16 = sshll.u32 (!%p151_p2), %s291_s15, 2  ;;  %s197_s17 = sld [smem:[#allocation2]] (!%p151_p2) }
   0x7   : > { %154 = sbr.rel (%p151_p2) target bundleno = 25 (0x19), region = 32  ;;  %p180_p3 = scmp.lt.s32.totalorder (!%p151_p2), %s296_s16, 15 }
   0xc   : > { %s368_s16 = smov (!%p180_p3, %s296_s16), 15  ;;  %v210_v6 = vstv %s197_s17 }
   0xd   : > { %s297_s2 = sshll.u32 %s368_s16, 3 }
   0xe   : > { %s183_s20 = scalar_lea.vmem %s363_s0, %s297_s2  ;;  %s189_s23 = scalar_lea.vmem %s364_s1, %s297_s2 }
   0xf   : > { %v198_v0 = vld [vmem:[%s183_s20] sm:$0xff]  ;;  %v199_v1 = vld [vmem:[%s183_s20 + $0x8] sm:$0xff]  ;;  %v200_v2 = vld [vmem:[%s183_s20 + $0x10] sm:$0xff]  ;;  %s195_s26 = scalar_lea.vmem %s366_s3, %s297_s2 }
  0x10   : > { %v201_v3 = vld [vmem:[%s183_s20 + $0x18] sm:$0xff]  ;;  %v202_v4 = vld [vmem:[%s189_s23] sm:$0xff]  ;;  %v203_v5 = vld [vmem:[%s189_s23 + $0x8] sm:$0xff] }
  0x11   : > { %v204_v7 = vld [vmem:[%s189_s23 + $0x10] sm:$0xff]  ;;  %v205_v8 = vld [vmem:[%s189_s23 + $0x18] sm:$0xff]  ;;  %v206_v9 = vsub.f32 %v202_v4, %v198_v0  ;;  %v207_v10 = vsub.f32 %v203_v5, %v199_v1 }
  0x12   : > { %v208_v11 = vsub.f32 %v204_v7, %v200_v2  ;;  %v209_v12 = vsub.f32 %v205_v8, %v201_v3 }
  0x13   : > { %v211_v13 = vmul.f32 %v210_v6, %v206_v9  ;;  %v212_v14 = vmul.f32 %v210_v6, %v207_v10 }
  0x14   : > { %v213_v15 = vmul.f32 %v210_v6, %v208_v11  ;;  %v214_v16 = vmul.f32 %v210_v6, %v209_v12 }
  0x15   : > { %v215_v17 = vadd.f32 %v211_v13, %v198_v0  ;;  %v216_v18 = vadd.f32 %v212_v14, %v199_v1 }
  0x16   : > { %v217_v19 = vadd.f32 %v213_v15, %v200_v2  ;;  %v218_v20 = vadd.f32 %v214_v16, %v201_v3 }
  0x17   : > { %219 = vst [vmem:[%s195_s26] sm:$0xff] %v215_v17  ;;  %220 = vst [vmem:[%s195_s26 + $0x8] sm:$0xff] %v216_v18 }
  0x18   : > { %221 = vst [vmem:[%s195_s26 + $0x10] sm:$0xff] %v217_v19  ;;  %222 = vst [vmem:[%s195_s26 + $0x18] sm:$0xff] %v218_v20 }
  0x19 PF: > { %s14_s14 = sadd.s32 1, %s318_s14  }
  0x1a   : > { %p11_p4 = scmp.ge.s32.totalorder %s14_s14, 6  }
  0x1c   :  { %13 = sbr.rel (!%p11_p4) target bundleno = 2 (0x2), region = 65 }

// kernel: _swa_update_all.6
= control target key start
LH: loop header
LB: loop body
LE: loop exit
PB: predicated region body
PF: predicated region fallthrough
CT: control target
= control target key end

     0   :  { %s817_s0 = inlined_call_operand.hbm [shape: f32[128,128], index: 0, kind: input, shape index: {}, may-alias: {0,3}]   ;;  %s818_s1 = inlined_call_operand.hbm [shape: f32[128,128], index: 1, kind: input, shape index: {}]   ;;  %s819_s2 = inlined_call_operand.<no memory space> [shape: f32[1,1], index: 2, kind: input, shape index: {}]   ;;  %s820_s3 = inlined_call_operand.hbm [shape: f32[128,128], index: 3, kind: output, shape index: {}, may-alias: {0,3}]  }
   0x1   :  { %8 = sst [smem:[#allocation2]] %s819_s2 }
   0x2   :  { %9 = vsyncpa [#allocation4], 0 }
   0x3   :  { %11 = vsyncpa [#allocation4 + $0x1], 0 }
   0x4   :  { %12 = vsyncpa [#allocation7], 0 }
   0x5   :  { %14 = vsyncpa [#allocation7 + $0x1], 0 }
   0x6   :  { %15 = vsyncpa [#allocation5], 0 }
   0x7   :  { %17 = vsyncpa [#allocation5 + $0x1], 0  ;;  %s601_s14 = smov 0   ;;  %s603_s15 = smov 0  }
   0x8   :  { %s605_s16 = smov 0   ;;  %s607_s17 = smov 0  }
   0x9 LB: > { %s622_s2 = sadd.s32 4294967295, %s569_s17   ;;  %s369_s18 = sadd.s32 4294967294, %s569_s17   ;;  %s569_s17 = sphi %s607_s17, %s835_s17   ;;  %s565_s16 = sphi %s605_s16, %s834_s16   ;;  %s561_s15 = sphi %s603_s15, %s833_s15   ;;  %s557_s14 = sphi %s601_s14, %s832_s14  }
   0xa   : > { %s626_s19 = sadd.s32 1, %s569_s17   ;;  %s30_s20 = sadd.s32 1, %s565_s16 }
   0xb   : > { %s27_s21 = ssub.s32 %s569_s17, %s626_s19  ;;  %p37_p0 = scmp.ne.s32.totalorder %s565_s16, %s561_s15 }
   0xc   : > { %p28_p1 = scmp.eq.s32.totalorder %s27_s21, 0  ;;  %p38_p2 = scmp.eq.s32.totalorder %s569_s17, 0 }
   0xd   : > { %p43_p3 = scmp.ne.s32.totalorder %s561_s15, %s557_s14  ;;  %p44_p4 = scmp.eq.s32.totalorder %s622_s2, 0 }
   0xe   : > { %s638_s22 = scalar_select %p28_p1, %s565_s16, %s30_s20  }
   0xf   : > { %p640_p5 = por %p38_p2, %p37_p0  ;;  %p644_p6 = por %p44_p4, %p43_p3 }
  0x10   : > { %p114_p7 = scmp.eq.s32.totalorder %s622_s2, 3  ;;  %p120_p8 = scmp.eq.s32.totalorder %s369_s18, 3 }
  0x11   : > { %s824_s24 = scalar_select %p644_p6, 1, 0 }
  0x12   : > { %p407_p9 = scmp.lt.s32.totalorder %s569_s17, 4  ;;  %p650_p10 = por %p114_p7, %p37_p0 }
  0x13   : > { %p654_p11 = por %p120_p8, %p43_p3  ;;  %s659_s27 = sand.u32 1, %s565_s16  }
  0x14   : > { %s825_s25 = scalar_select %p650_p10, 1, 0 }
  0x15   : > { %s826_s26 = scalar_select %p654_p11, 1, 0 }
  0x16   : > { %s387_s28 = sshll.u32 %s569_s17, 9  ;;  %s372_s29 = sshll.u32 %s659_s27, 5 }
  0x17   : > { %s668_s5 = scalar_lea.hbm %s817_s0, %s387_s28  ;;  %s147_s6 = scalar_lea.vmem [#allocation3], %s372_s29 }
  0x18   : > { %s154_s7 = sshll.u32 %s147_s6, 4  ;;  %p674_p12 = pnand %p407_p9, %p640_p5  ;;  %s678_s7 = int_to_ptr.vmem [resolvable:$true] %s154_s7 }
  0x19   : > { %s144_s9 = scalar_lea.sflag [#allocation4], %s659_s27  ;;  %s445_s10 = scalar_lea.hbm %s668_s5, 512 }
  0x1a   : > { %p446_p13 = scmp.ne.s32.totalorder %s668_s5, %s445_s10  ;;  %p447_p0 = pneg %p674_p12 }
  0x1b   : > { %s450_s13 = scalar_lea.hbm %s817_s0, 2048  ;;  %p451_p3 = scmp.lt.s32.totalorder %s668_s5, %s817_s0 }
  0x1c   : > { %p448_p1 = pnand %p447_p0, %p446_p13  ;;  %p452_p4 = scmp.lt.s32.totalorder %s450_s13, %s445_s10 }
  0x1e   : > { %p449_p2 = pneg %p448_p1  ;;  %p453_p5 = por %p452_p4, %p451_p3 }
  0x20   : > { %p454_p7 = pnand %p453_p5, %p449_p2 }
  0x22   : > { %457 = shalt.err (!%p454_p7)
}
  0x23   : > { %s458_s21 = scalar_lea.vmem %s678_s7, 512  ;;  %s571_s23 = smov [#allocation3]  }
  0x24   : > { %p459_p8 = scmp.ne.s32.totalorder %s678_s7, %s458_s21  ;;  %s463_s30 = sshll.u32 %s571_s23, 4  ;;  %s464_s30 = int_to_ptr.vmem [resolvable:$false] %s463_s30 }
  0x25   : > { %s465_s4 = scalar_lea.vmem %s464_s30, 1024  ;;  %p466_p1 = scmp.lt.s32.totalorder %s678_s7, %s464_s30 }
  0x26   : > { %p461_p9 = pnand %p459_p8, %p447_p0  ;;  %p467_p11 = scmp.lt.s32.totalorder %s465_s4, %s458_s21 }
  0x28   : > { %p462_p13 = pneg %p461_p9  ;;  %p468_p10 = por %p467_p11, %p466_p1 }
  0x2a   : > { %p469_p3 = pnand %p468_p10, %p462_p13 }
  0x2c   : > { %472 = shalt.err (!%p469_p3)
}
  0x2d   : > { %s572_s6 = smov 128   ;;  %s573_s10 = smov 8  }
  0x2e   : > { %399 = dma.hbm_to_vmem [thread:$0]  (!%p674_p12), %s668_s5, 512, %s678_s7, %s144_s9, %s572_s6, %s572_s6, %s573_s10  }
  0x2f   : > { %p378_p10 = scmp.ge.s32.totalorder %s569_s17, 1  ;;  %p183_p11 = scmp.lt.s32.totalorder %s569_s17, 5 }
  0x30   : > { %s721_s18 = scalar_lea.hbm %s818_s1, %s387_s28  ;;  %s168_s20 = scalar_lea.vmem [#allocation6], %s372_s29 }
  0x31   : > { %p712_p2 = pnand %p378_p10, %p183_p11  ;;  %s175_s21 = sshll.u32 %s168_s20, 4  ;;  %s725_s21 = int_to_ptr.vmem [resolvable:$true] %s175_s21 }
  0x32   : > { %s165_s5 = scalar_lea.sflag [#allocation7], %s659_s27  ;;  %s473_s7 = scalar_lea.hbm %s721_s18, 512 }
  0x33   : > { %p474_p4 = scmp.ne.s32.totalorder %s721_s18, %s473_s7  ;;  %s478_s28 = scalar_lea.hbm %s818_s1, 2048 }
  0x34   : > { %p479_p8 = scmp.lt.s32.totalorder %s721_s18, %s818_s1  ;;  %p480_p9 = scmp.lt.s32.totalorder %s478_s28, %s473_s7 }
  0x35   : > { %p476_p5 = pnand %p474_p4, %p447_p0 }
  0x36   : > { %p481_p13 = por %p480_p9, %p479_p8 }
  0x37   : > { %p477_p7 = pneg %p476_p5 }
  0x39   : > { %p482_p1 = pnand %p481_p13, %p477_p7 }
  0x3b   : > { %485 = shalt.err (!%p482_p1)
}
  0x3c   : > { %s486_s27 = scalar_lea.vmem %s725_s21, 512  ;;  %s574_s29 = smov [#allocation6]  }
  0x3d   : > { %p487_p3 = scmp.ne.s32.totalorder %s725_s21, %s486_s27  ;;  %s491_s12 = sshll.u32 %s574_s29, 4  ;;  %s492_s12 = int_to_ptr.vmem [resolvable:$false] %s491_s12 }
  0x3e   : > { %s493_s13 = scalar_lea.vmem %s492_s12, 1024  ;;  %p494_p4 = scmp.lt.s32.totalorder %s725_s21, %s492_s12 }
  0x3f   : > { %p489_p10 = pnand %p487_p3, %p447_p0  ;;  %p495_p5 = scmp.lt.s32.totalorder %s493_s13, %s486_s27 }
  0x41   : > { %p490_p11 = pneg %p489_p10  ;;  %p496_p6 = por %p495_p5, %p494_p4 }
  0x43   : > { %p497_p8 = pnand %p496_p6, %p490_p11 }
  0x45   : > { %500 = shalt.err (!%p497_p8)
}
  0x46   : > { %402 = dma.hbm_to_vmem [thread:$0]  (!%p674_p12), %s721_s18, 512, %s725_s21, %s165_s5, %s572_s6, %s572_s6, %s573_s10  }
  0x47   : > { %187 = sbr.rel (%p712_p2) target bundleno = 105 (0x69), region = 32  ;;  %s756_s20 = sand.u32 (!%p712_p2), 1, %s561_s15  }
  0x48   : > { %s379_s7 = sshll.u32 (!%p712_p2), %s756_s20, 5  ;;  %s190_s9 = scalar_lea.sflag (!%p712_p2), [#allocation4], %s756_s20 }
  0x49   : > { %s193_s23 = scalar_lea.vmem (!%p712_p2), [#allocation3], %s379_s7  ;;  %p829_p6 = scmp.ne.s32.totalorder (!%p712_p2), %s824_s24, 0 }
  0x4c   : > { %544 = dma.done.wait (%p829_p6), %s190_s9, 512  }
  0x4d   : > { %546 = vsyncadd (%p829_p6), %s190_s9, 4294966784  ;;  %s199_s8 = scalar_lea.sflag [#allocation7], %s756_s20  ;;  %s202_s6 = scalar_lea.vmem [#allocation6], %s379_s7 }
  0x4e   : > { %548 = dma.done.wait (%p829_p6), %s199_s8, 512  }
  0x4f   : > { %550 = vsyncadd (%p829_p6), %s199_s8, 4294966784  ;;  %s233_s10 = sld [smem:[#allocation2]]  ;;  %v234_v0 = vld [vmem:[%s193_s23] sm:$0xff]  ;;  %v235_v3 = vld [vmem:[%s193_s23 + $0x8] sm:$0xff]  ;;  %s229_s11 = scalar_lea.vmem [#allocation8], %s379_s7 }
  0x50   : > { %v238_v1 = vld [vmem:[%s202_s6] sm:$0xff]  ;;  %v239_v5 = vld [vmem:[%s202_s6 + $0x8] sm:$0xff]  ;;  %v236_v6 = vld [vmem:[%s193_s23 + $0x10] sm:$0xff]  ;;  %s273_s18 = sshll.u32 %s229_s11, 4  ;;  %s389_s24 = sshll.u32 %s622_s2, 9  ;;  %s770_s18 = int_to_ptr.vmem [resolvable:$true] %s273_s18 }
  0x51   : > { %v242_v4 = vsub.f32 %v238_v1, %v234_v0  ;;  %v240_v7 = vld [vmem:[%s202_s6 + $0x10] sm:$0xff]  ;;  %v243_v8 = vsub.f32 %v239_v5, %v235_v3  ;;  %v237_v10 = vld [vmem:[%s193_s23 + $0x18] sm:$0xff]  ;;  %s775_s28 = scalar_lea.hbm %s820_s3, %s389_s24  ;;  %s260_s2 = scalar_lea.sflag [#allocation5], %s756_s20 }
  0x52   : > { %v244_v9 = vsub.f32 %v240_v7, %v236_v6  ;;  %v241_v11 = vld [vmem:[%s202_s6 + $0x18] sm:$0xff]  ;;  %s501_s30 = scalar_lea.vmem %s770_s18, 512  ;;  %p830_p0 = scmp.ne.s32.totalorder %s825_s25, 0 }
  0x53   : > { %v245_v13 = vsub.f32 %v241_v11, %v237_v10  ;;  %p502_p12 = scmp.ne.s32.totalorder %s770_s18, %s501_s30  ;;  %s575_s4 = smov [#allocation8]  }
  0x54   : > { %s505_s27 = sshll.u32 %s575_s4, 4  ;;  %s506_s27 = int_to_ptr.vmem [resolvable:$false] %s505_s27 }
  0x55   : > { %v246_v2 = vstv %s233_s10  ;;  %p503_p2 = pnand %p502_p12, %p830_p0  ;;  %s507_s29 = scalar_lea.vmem %s506_s27, 1024 }
  0x56   : > { %v247_v12 = vmul.f32 %v246_v2, %v242_v4  ;;  %v248_v14 = vmul.f32 %v246_v2, %v243_v8  ;;  %v249_v15 = vmul.f32 %v246_v2, %v244_v9  ;;  %v250_v17 = vmul.f32 %v246_v2, %v245_v13  ;;  %p508_p9 = scmp.lt.s32.totalorder %s770_s18, %s506_s27  ;;  %p509_p13 = scmp.lt.s32.totalorder %s507_s29, %s501_s30 }
  0x57   : > { %p504_p7 = pneg %p503_p2 }
  0x58   : > { %v251_v16 = vadd.f32 %v247_v12, %v234_v0  ;;  %v252_v18 = vadd.f32 %v248_v14, %v235_v3  ;;  %v253_v19 = vadd.f32 %v249_v15, %v236_v6  ;;  %v254_v20 = vadd.f32 %v250_v17, %v237_v10  ;;  %p510_p1 = por %p509_p13, %p508_p9 }
  0x5a   : > { %255 = vst [vmem:[%s229_s11] sm:$0xff] %v251_v16  ;;  %256 = vst [vmem:[%s229_s11 + $0x8] sm:$0xff] %v252_v18  ;;  %p511_p3 = pnand %p510_p1, %p504_p7 }
  0x5b   : > { %257 = vst [vmem:[%s229_s11 + $0x10] sm:$0xff] %v253_v19  ;;  %258 = vst [vmem:[%s229_s11 + $0x18] sm:$0xff] %v254_v20 }
  0x5c   : > { %514 = shalt.err (!%p511_p3)
}
  0x5d   : > { %s515_s12 = scalar_lea.hbm %s775_s28, 512  ;;  %s519_s9 = scalar_lea.hbm %s820_s3, 2048 }
  0x5e   : > { %p516_p10 = scmp.ne.s32.totalorder %s775_s28, %s515_s12  ;;  %p520_p5 = scmp.lt.s32.totalorder %s775_s28, %s820_s3 }
  0x5f   : > { %p521_p8 = scmp.lt.s32.totalorder %s519_s9, %s515_s12 }
  0x60   : > { %p517_p11 = pnand %p516_p10, %p830_p0 }
  0x61   : > { %p522_p6 = por %p521_p8, %p520_p5 }
  0x62   : > { %p518_p4 = pneg %p517_p11 }
  0x64   : > { %p523_p12 = pnand %p522_p6, %p518_p4 }
  0x66   : > { %526 = shalt.err (!%p523_p12)
}
  0x67   : > { %s576_s6 = smov 128   ;;  %s577_s10 = smov 8  }
  0x68   : > { %394 = dma.vmem_to_hbm [thread:$0]  (%p830_p0), %s770_s18, 512, %s775_s28, %s260_s2, %s576_s6, %s576_s6, %s577_s10  }
  0x69 PF: > { %p408_p2 = scmp.ge.s32.totalorder %s569_s17, 2  ;;  %s288_s11 = sand.u32 1, %s557_s14  }
  0x6a   : > { %p831_p7 = scmp.ne.s32.totalorder %s826_s26, 0  ;;  %s289_s24 = scalar_lea.sflag [#allocation5], %s288_s11 }
  0x6c   : > { %p404_p9 = pnand %p408_p2, %p831_p7 }
  0x6e   : > { %p405_p13 = pneg %p404_p9 }
  0x70   : > { %552 = dma.done.wait (%p405_p13), %s289_s24, 512  }
  0x71   : > { %554 = vsyncadd (%p405_p13), %s289_s24, 4294966784  ;;  %p20_p1 = scmp.ge.s32.totalorder %s626_s19, 6   ;;  %s832_s14 = smov %s561_s15 }
  0x72   : > { %s833_s15 = smov %s565_s16  ;;  %s834_s16 = smov %s638_s22 }
  0x73   : > { %s835_s17 = smov %s626_s19  ;;  %22 = sbr.rel (!%p20_p1) target bundleno = 9 (0x9), region = 90 }
  0x78   :  { %294 = vsyncpa [#allocation4], 1 }
  0x79   :  { %296 = vsyncpa [#allocation4 + $0x1], 1 }
  0x7a   :  { %297 = vsyncpa [#allocation7], 1 }
  0x7b   :  { %299 = vsyncpa [#allocation7 + $0x1], 1 }
  0x7c   :  { %300 = vsyncpa [#allocation5], 1 }
  0x7d   :  { %302 = vsyncpa [#allocation5 + $0x1], 1 }

// kernel: _swa_update_all.4
= control target key start
LH: loop header
LB: loop body
LE: loop exit
PB: predicated region body
PF: predicated region fallthrough
CT: control target
= control target key end

     0   :  { %s59_s0 = inlined_call_operand.vmem [shape: f32[1,128], index: 0, kind: input, shape index: {}, may-alias: {0,3}]   ;;  %s60_s1 = inlined_call_operand.vmem [shape: f32[1,128], index: 1, kind: input, shape index: {}]   ;;  %s61_s2 = inlined_call_operand.<no memory space> [shape: f32[1,1], index: 2, kind: input, shape index: {}]   ;;  %s62_s3 = inlined_call_operand.vmem [shape: f32[1,128], index: 3, kind: output, shape index: {}, may-alias: {0,3}]  }
   0x1   :  { %v16_v0 = vld [vmem:[%s59_s0] sm:$0x1]  ;;  %v19_v2 = vstv %s61_s2 }
   0x2   :  { %v17_v1 = vld [vmem:[%s60_s1] sm:$0x1] }
   0x3   :  { %v18_v3 = vsub.f32 %v17_v1, %v16_v0 }
   0x5   :  { %v20_v4 = vmul.f32 %v19_v2, %v18_v3 }
   0x7   :  { %v21_v5 = vadd.f32 %v20_v4, %v16_v0 }
   0x9   :  { %22 = vst [vmem:[%s62_s3] sm:$0x1] %v21_v5 }

</bundles_post_ra>
